<compile_context>
chip_gen: v7x
topology: tpu7x:2x2x1
jax: 0.10.0
libtpu: 0.0.40
codegen_flags: <defaults>
</compile_context>

<pallas_src>
import jax
import jax.numpy as jnp
from jax.experimental import pallas as pl
from jax.experimental.pallas import tpu as pltpu

INPUT_SIZE = 64
HIDDEN = 4             # fc1 out_features (logical)
HIDDEN_PAD = 8         # padded to sublane tile
NUM_CLASSES = 100      # fc4 out_features (logical; kept un-padded on output)


def _round_up(n, m):
    return ((n + m - 1) // m) * m


def _cdiv(a, b):
    return -(-a // b)


def mynet_kernel(x_ref, w1_ref, b1_ref, w4_ref, b4_ref, o_ref):
    # fc1: [TB, 64] f32 @ [64, 8] f32 -> f32, +bias, ReLU
    h = jnp.dot(x_ref[...], w1_ref[...], preferred_element_type=jnp.float32)
    h = jnp.maximum(h + b1_ref[...], 0.0)
    # fc4: [TB, 8] f32 @ [8, 100] f32 -> f32, +bias, ReLU
    out = jnp.dot(h, w4_ref[...], preferred_element_type=jnp.float32)
    o_ref[...] = jnp.maximum(out + b4_ref[...], 0.0).astype(o_ref.dtype)


def _jnp_forward(x, w1, b1, w4, b4):
    h = jnp.maximum(jnp.dot(x, w1) + b1, 0.0)
    return jnp.maximum(jnp.dot(h, w4) + b4, 0.0)


def mynet_forward(x, w1, b1, w4, b4, *, tile_b=4096, min_pallas_batch=1024,
                  out_dtype=jnp.float32):
    """x: [B, 64] f32.  w1: [64,4], b1: [1,4], w4: [4,100], b4: [1,100]
    (f32, stored as [in, out]).  Returns [B, 100] in out_dtype."""
    B = x.shape[0]
    x = x.astype(jnp.float32)

    # Tiny batches: a single fused XLA pass beats any kernel launch.
    if min_pallas_batch > 0 and B < min_pallas_batch:
        return _jnp_forward(x, w1, b1, w4, b4).astype(out_dtype)

    # --- pad params to sublane-friendly shapes (tiny, one-time) ---
    w1p = jnp.zeros((INPUT_SIZE, HIDDEN_PAD), jnp.float32).at[:, :HIDDEN].set(
        w1.astype(jnp.float32))
    b1p = jnp.zeros((1, HIDDEN_PAD), jnp.float32).at[:, :HIDDEN].set(
        b1.reshape(1, HIDDEN).astype(jnp.float32))
    w4p = jnp.zeros((HIDDEN_PAD, NUM_CLASSES), jnp.float32).at[:HIDDEN, :].set(
        w4.astype(jnp.float32))
    b4p = b4.reshape(1, NUM_CLASSES).astype(jnp.float32)

    # --- choose batch tile / grid ---
    # Keep tb a multiple of 8; force >= 2 grid steps when possible so both
    # v7x TensorCores participate (harmless on single-TC v5e/v6e).
    B8 = _round_up(max(B, 1), 8)
    n_steps = max(1, _cdiv(B8, tile_b))
    if n_steps == 1 and B8 >= 16:
        n_steps = 2
    tb = _round_up(_cdiv(B8, n_steps), 8)
    Bp = tb * n_steps

    # Batch pad only (zeros); NO dtype cast of x in the wrapper.
    x_p = x if Bp == B else jnp.pad(x, ((0, Bp - B), (0, 0)))

    # --- VMEM budget: double-buffered x/out tiles + resident params ---
    tile_bytes = tb * (INPUT_SIZE + NUM_CLASSES) * 4
    param_bytes = (w1p.size + b1p.size + w4p.size + b4p.size) * 4
    vmem_needed = 2 * tile_bytes + 2 * param_bytes
    vmem_limit = int(min(max(vmem_needed + (4 << 20), 16 << 20), 60 << 20))

    flops = 2 * Bp * (INPUT_SIZE * HIDDEN_PAD + HIDDEN_PAD * NUM_CLASSES)
    bytes_accessed = int(x_p.size * 4 + param_bytes
                         + Bp * NUM_CLASSES * jnp.dtype(out_dtype).itemsize)

    out_padded = pl.pallas_call(
        mynet_kernel,
        out_shape=jax.ShapeDtypeStruct((Bp, NUM_CLASSES), out_dtype),
        grid=(n_steps,),
        in_specs=[
            # batch-tiled activations (double-buffered by the pipeline)
            pl.BlockSpec((tb, INPUT_SIZE), lambda i: (i, 0)),
            # weights/biases: same block every step -> stay resident in VMEM
            pl.BlockSpec((INPUT_SIZE, HIDDEN_PAD), lambda i: (0, 0)),
            pl.BlockSpec((1, HIDDEN_PAD), lambda i: (0, 0)),
            pl.BlockSpec((HIDDEN_PAD, NUM_CLASSES), lambda i: (0, 0)),
            pl.BlockSpec((1, NUM_CLASSES), lambda i: (0, 0)),
        ],
        # last dim 100 == full array dim (legal); no 128->100 post-slice needed
        out_specs=pl.BlockSpec((tb, NUM_CLASSES), lambda i: (i, 0)),
        compiler_params=pltpu.CompilerParams(
            dimension_semantics=("parallel",),
            vmem_limit_bytes=vmem_limit),
        cost_estimate=pl.CostEstimate(
            flops=flops, transcendentals=0, bytes_accessed=bytes_accessed),
    )(x_p, w1p, b1p, w4p, b4p)

    # Only a (cheap) batch-row slice remains, and only if B was padded.
    return out_padded if Bp == B else out_padded[:B]


def init_params(key):
    """Deterministic init mimicking nn.Linear's U(-1/sqrt(fan_in), 1/sqrt(fan_in)).
    Weights stored as [in, out] (transposed vs. PyTorch's [out, in])."""
    k1, k2, k3, k4 = jax.random.split(key, 4)
    bound1 = 1.0 / jnp.sqrt(INPUT_SIZE)
    bound4 = 1.0 / jnp.sqrt(HIDDEN)
    w1 = jax.random.uniform(k1, (INPUT_SIZE, HIDDEN), jnp.float32, -bound1, bound1)
    b1 = jax.random.uniform(k2, (1, HIDDEN), jnp.float32, -bound1, bound1)
    w4 = jax.random.uniform(k3, (HIDDEN, NUM_CLASSES), jnp.float32, -bound4, bound4)
    b4 = jax.random.uniform(k4, (1, NUM_CLASSES), jnp.float32, -bound4, bound4)
    return w1, b1, w4, b4


def reference_forward(x, w1, b1, w4, b4):
    """Pure-JAX f32 reference (same recipe as the f32 PyTorch module)."""
    return _jnp_forward(x.astype(jnp.float32), w1, b1, w4, b4)


if __name__ == "__main__":
    key = jax.random.PRNGKey(0)
    kx, kp, kx2 = jax.random.split(key, 3)
    w1, b1, w4, b4 = init_params(kp)

    # Small-shape test (B=2), forcing the Pallas path so the kernel runs.
    B = 2
    x = jax.random.normal(kx, (B, INPUT_SIZE), jnp.float32)
    out = mynet_forward(x, w1, b1, w4, b4, min_pallas_batch=0)
    out = jax.block_until_ready(out)
    ref = reference_forward(x, w1, b1, w4, b4)
    assert out.shape == (B, NUM_CLASSES)
    assert jnp.allclose(out, ref, atol=1e-2, rtol=1e-2), \
        f"max abs err {jnp.max(jnp.abs(out - ref))}"

    # Multi-step grid + batch-padding path (exercises grid>=2 / partial tile).
    B2 = 300
    x2 = jax.random.normal(kx2, (B2, INPUT_SIZE), jnp.float32)
    out2 = mynet_forward(x2, w1, b1, w4, b4, tile_b=128, min_pallas_batch=0)
    out2 = jax.block_until_ready(out2)
    ref2 = reference_forward(x2, w1, b1, w4, b4)
    assert out2.shape == (B2, NUM_CLASSES)
    assert jnp.allclose(out2, ref2, atol=1e-2, rtol=1e-2), \
        f"max abs err {jnp.max(jnp.abs(out2 - ref2))}"

    print("KERNEL_OK")
</pallas_src>

<mosaic_0001>
module attributes {stable_mosaic.version = 11 : i64} {
  func.func @mynet_kernel(%arg0: i32, %arg1: memref<8x64xf32, #tpu.memory_space<vmem>>, %arg2: memref<64x8xf32, #tpu.memory_space<vmem>>, %arg3: memref<1x8xf32, #tpu.memory_space<vmem>>, %arg4: memref<8x100xf32, #tpu.memory_space<vmem>>, %arg5: memref<1x100xf32, #tpu.memory_space<vmem>>, %arg6: memref<8x100xf32, #tpu.memory_space<vmem>>) attributes {dimension_semantics = [#tpu.dimension_semantics<parallel>], iteration_bounds = array<i64: 1>, scalar_prefetch = 0 : i64, scratch_operands = 0 : i64, tpu.core_type = #tpu.core_type<tc>, window_params = [{transform_indices = @transform_0, window_bounds = array<i64: 8, 64>}, {pipeline_mode = #tpu.pipeline_mode<synchronous>, transform_indices = @transform_1, window_bounds = array<i64: 64, 8>}, {pipeline_mode = #tpu.pipeline_mode<synchronous>, transform_indices = @transform_2, window_bounds = array<i64: 1, 8>}, {pipeline_mode = #tpu.pipeline_mode<synchronous>, transform_indices = @transform_3, window_bounds = array<i64: 8, 100>}, {pipeline_mode = #tpu.pipeline_mode<synchronous>, transform_indices = @transform_4, window_bounds = array<i64: 1, 100>}, {transform_indices = @transform_5, window_bounds = array<i64: 8, 100>}]} {
    %c0 = arith.constant 0 : index
    %c0_0 = arith.constant 0 : index
    %0 = vector.load %arg1[%c0, %c0_0] : memref<8x64xf32, #tpu.memory_space<vmem>>, vector<8x64xf32>
    %c0_1 = arith.constant 0 : index
    %c0_2 = arith.constant 0 : index
    %1 = vector.load %arg2[%c0_1, %c0_2] : memref<64x8xf32, #tpu.memory_space<vmem>>, vector<64x8xf32>
    %cst = arith.constant dense<0.000000e+00> : vector<8x8xf32>
    %2 = tpu.matmul %0, %1, %cst {dimension_numbers = #tpu.dot_dimension_numbers<[1], [0], [0], [1], [0, 0, 1, 1], [], []>} : vector<8x64xf32>, vector<64x8xf32>, vector<8x8xf32> -> vector<8x8xf32>
    %c0_3 = arith.constant 0 : index
    %c0_4 = arith.constant 0 : index
    %3 = vector.load %arg3[%c0_3, %c0_4] : memref<1x8xf32, #tpu.memory_space<vmem>>, vector<1x8xf32>
    %4 = vector.broadcast %3 : vector<1x8xf32> to vector<8x8xf32>
    %5 = arith.addf %2, %4 : vector<8x8xf32>
    %cst_5 = arith.constant 0.000000e+00 : f32
    %6 = vector.broadcast %cst_5 : f32 to vector<8x8xf32>
    %7 = arith.maximumf %5, %6 : vector<8x8xf32>
    %c0_6 = arith.constant 0 : index
    %c0_7 = arith.constant 0 : index
    %8 = vector.load %arg4[%c0_6, %c0_7] : memref<8x100xf32, #tpu.memory_space<vmem>>, vector<8x100xf32>
    %cst_8 = arith.constant dense<0.000000e+00> : vector<8x100xf32>
    %9 = tpu.matmul %7, %8, %cst_8 {dimension_numbers = #tpu.dot_dimension_numbers<[1], [0], [0], [1], [0, 0, 1, 1], [], []>} : vector<8x8xf32>, vector<8x100xf32>, vector<8x100xf32> -> vector<8x100xf32>
    %c0_9 = arith.constant 0 : index
    %c0_10 = arith.constant 0 : index
    %10 = vector.load %arg5[%c0_9, %c0_10] : memref<1x100xf32, #tpu.memory_space<vmem>>, vector<1x100xf32>
    %11 = vector.broadcast %10 : vector<1x100xf32> to vector<8x100xf32>
    %12 = arith.addf %9, %11 : vector<8x100xf32>
    %cst_11 = arith.constant 0.000000e+00 : f32
    %13 = vector.broadcast %cst_11 : f32 to vector<8x100xf32>
    %14 = arith.maximumf %12, %13 : vector<8x100xf32>
    %c0_12 = arith.constant 0 : index
    %c0_13 = arith.constant 0 : index
    %15 = vector.load %arg6[%c0_12, %c0_13] : memref<8x100xf32, #tpu.memory_space<vmem>>, vector<8x100xf32>
    tpu.vector_store %arg6[%c0_12, %c0_13], %14 {strides = array<i32>} : memref<8x100xf32, #tpu.memory_space<vmem>>, vector<8x100xf32>,
    return
  }
  func.func @transform_0(%arg0: i32) -> (i32, i32) {
    %c0_i32 = arith.constant 0 : i32
    %c0_i32_0 = arith.constant 0 : i32
    return %arg0, %c0_i32 : i32, i32
  }
  func.func @transform_1(%arg0: i32) -> (i32, i32) {
    %c0_i32 = arith.constant 0 : i32
    %c0_i32_0 = arith.constant 0 : i32
    %c0_i32_1 = arith.constant 0 : i32
    return %c0_i32, %c0_i32_0 : i32, i32
  }
  func.func @transform_2(%arg0: i32) -> (i32, i32) {
    %c0_i32 = arith.constant 0 : i32
    %c0_i32_0 = arith.constant 0 : i32
    %c0_i32_1 = arith.constant 0 : i32
    return %c0_i32, %c0_i32_0 : i32, i32
  }
  func.func @transform_3(%arg0: i32) -> (i32, i32) {
    %c0_i32 = arith.constant 0 : i32
    %c0_i32_0 = arith.constant 0 : i32
    %c0_i32_1 = arith.constant 0 : i32
    return %c0_i32, %c0_i32_0 : i32, i32
  }
  func.func @transform_4(%arg0: i32) -> (i32, i32) {
    %c0_i32 = arith.constant 0 : i32
    %c0_i32_0 = arith.constant 0 : i32
    %c0_i32_1 = arith.constant 0 : i32
    return %c0_i32, %c0_i32_0 : i32, i32
  }
  func.func @transform_5(%arg0: i32) -> (i32, i32) {
    %c0_i32 = arith.constant 0 : i32
    %c0_i32_0 = arith.constant 0 : i32
    return %arg0, %c0_i32 : i32, i32
  }
}

</mosaic_0001>

<bundles_post_ra>
// kernel: tpu_custom_call.1
= control target key start
LH: loop header
LB: loop body
LE: loop exit
PB: predicated region body
PF: predicated region fallthrough
CT: control target
= control target key end

     0   :  { %v290_v3 = vmov 0.0|0.0   ;;  %vm291_vm0 = vmmov 0   ;;  %v292_v6 = vmov 0.0   ;;  %s372_s0 = inlined_call_operand.vmem [shape: f32[8,64], index: 0, kind: input, shape index: {}]   ;;  %s373_s1 = inlined_call_operand.vmem [shape: f32[64,8], index: 1, kind: input, shape index: {}]   ;;  %s374_s2 = inlined_call_operand.vmem [shape: f32[1,8], index: 2, kind: input, shape index: {}]   ;;  %s375_s3 = inlined_call_operand.vmem [shape: f32[8,100], index: 3, kind: input, shape index: {}]   ;;  %s376_s4 = inlined_call_operand.vmem [shape: f32[1,100], index: 4, kind: input, shape index: {}]   ;;  %s377_s5 = inlined_call_operand.hbm [shape: f32[8,100], index: 5, kind: output, shape index: {}]  }
   0x1   :  { %v22_v0 = vld [vmem:[%s373_s1] sm:$0xff]  ;;  %v23_v1 = vld [vmem:[%s373_s1 + $0x8] sm:$0xff]  ;;  %v24_v2 = vld [vmem:[%s373_s1 + $0x10] sm:$0xff]  ;;  %250 = vmatprep.subr.bf16.mxu0 %v290_v3  ;;  %242 = vmatprep.mubr.msk.f32.mxu0 %vm291_vm0, %v292_v6 }
   0x2   :  { %v251_v4 = vpack.c.bf16 %v23_v1, %v22_v0  ;;  %v25_v5 = vld [vmem:[%s373_s1 + $0x18] sm:$0xff]  ;;  %245 = vmatprep.subr.mxu1 %v292_v6  ;;  %247 = vmatprep.mubr.msk.f32.mxu1 %vm291_vm0, %v292_v6 }
   0x3   :  { %v254_v7 = vpack.c.bf16 %v25_v5, %v24_v2 }
   0x4   :  { %252 = vmatpush3.bf16.msra.mxu0 %v251_v4 }
   0x5   :  { %10 = vsyncpa [#allocation3], 0  ;;  %253 = vmatprep.subr.bf16.mxu0 %v290_v3  ;;  %v26_v8 = vld [vmem:[%s373_s1 + $0x20] sm:$0xff]  ;;  %v27_v9 = vld [vmem:[%s373_s1 + $0x28] sm:$0xff]  ;;  %vm37_vm1 = vcmask 523264   ;;  %vm120_vm2 = vcmask 64512  }
   0x6   :  { %v257_v10 = vpack.c.bf16 %v27_v9, %v26_v8  ;;  %v28_v11 = vld [vmem:[%s373_s1 + $0x30] sm:$0xff]  ;;  %v29_v12 = vld [vmem:[%s373_s1 + $0x38] sm:$0xff]  ;;  %v21_v14 = vld [vmem:[%s372_s0] sm:$0xff]  ;;  %s293_s0 = smov [#allocation2]   ;;  %vm195_vm3 = vcmask 818176  }
   0x7   :  { %v260_v13 = vpack.c.bf16 %v29_v12, %v28_v11  ;;  %v112_v15 = vld [vmem:[%s375_s3] sm:$0xff]  ;;  %s203_s16 = sshll.u32 %s293_s0, 4  ;;  %s204_s16 = int_to_ptr.vmem [resolvable:$true] %s203_s16 }
   0x8   :  { %255 = vmatpush3.bf16.msra.mxu0 %v254_v7  ;;  %246 = vmatpush3.msra.mxu1 %v112_v15  ;;  %v211_v16 = vld [vmem:[%s374_s2] ss:$0 sm:$0xff]  ;;  %s266_s2 = scalar_lea.vmem %s204_s16, 128  ;;  %p271_p1 = scmp.lt.s32.totalorder %s204_s16, %s204_s16 }
   0x9   :  { %256 = vmatprep.subr.bf16.mxu0 %v290_v3  ;;  %v213_v21 = vld [vmem:[%s376_s4] ss:$0 sm:$0xff]  ;;  %p267_p0 = scmp.ne.s32.totalorder %s204_s16, %s266_s2  ;;  %p272_p2 = scmp.lt.s32.totalorder %s266_s2, %s266_s2 }
   0xb   :  { %p273_p3 = por %p272_p2, %p271_p1 }
   0xc   :  { %258 = vmatpush3.bf16.msra.mxu0 %v257_v10 }
   0xd   :  { %259 = vmatprep.subr.bf16.mxu0 %v290_v3  ;;  %p274_p4 = pnand %p273_p3, %p267_p0 }
  0x10   :  { %261 = vmatpush3.bf16.msra.mxu0 %v260_v13 }
  0x13   :  { %243 = vmatmul.mubr.msk.f32.vlgmr.msra.gmra.mrb[0].mxu0 %vm37_vm1, %v21_v14 }
  0xe6   :  { %v107_v17 = vpop.f32.mrb[0].mxu0 }
  0xe7   :  { %v108_v18 = vadd.f32 %v211_v16, %v107_v17  ;;  %v244_v19 = vpop.f32.mrb[1].mxu0 }
  0xe9   :  { %v111_v20 = vmax.f32 %v108_v18, 0.0 }
  0xeb   :  { %248 = vmatmul.mubr.msk.f32.vlgmr.msra.gmra.mrb[0].mxu1 %vm120_vm2, %v111_v20 }
 0x1be   :  { %v190_v22 = vpop.f32.mrb[0].mxu1 }
 0x1bf   :  { %v191_v23 = vadd.f32 %v213_v21, %v190_v22  ;;  %v249_v24 = vpop.f32.mrb[1].mxu1 }
 0x1c1   :  { %v194_v25 = vmax.f32 %v191_v23, 0.0 }
 0x1c3   :  { %196 = vst.msk [vmem:[#allocation2] sm:$0xff] %vm195_vm3, %v194_v25 }
 0x1c4   :  { %277 = shalt.err (!%p274_p4)
}
 0x1c5   :  { %s278_s4 = scalar_lea.hbm %s377_s5, 128 }
 0x1c6   :  { %p279_p5 = scmp.ne.s32.totalorder %s377_s5, %s278_s4  ;;  %p282_p6 = scmp.lt.u32.totalorder %s278_s4, %s377_s5 }
 0x1c8   :  { %p284_p7 = pnand %p282_p6, %p279_p5 }
 0x1ca   :  { %287 = shalt.err (!%p284_p7)
}
 0x1cb   :  { %206 = dma.vmem_to_hbm [thread:$0]  %s204_s16, 128, %s377_s5, [#allocation3]  }
 0x1cc   :  { %288 = dma.done.wait [#allocation3], 128  }
 0x1cd   :  { %289 = vsyncadd [#allocation3], 4294967168 }
 0x1ce   :  { %210 = vsyncpa [#allocation3], 1 }

</bundles_post_ra>
